<compile_context>
chip_gen: v6e
topology: v6e:2x2x1
jax: 0.10.0
libtpu: 0.0.40
codegen_flags: <defaults>
</compile_context>

<pallas_src>
import functools

import jax
import jax.numpy as jnp
from jax.experimental import pallas as pl
from jax.experimental.pallas import tpu as pltpu


# ----------------------------------------------------------------------------
# Fused Pallas kernel: all coupling layers, transposed (features, batch) layout.
# ----------------------------------------------------------------------------
def _flow_kernel(n_couplings, n_layers, *refs):
    # refs = (x_ref, W0,b0, W1,b1, ... (n_couplings*n_layers pairs) ..., out_ref)
    x_ref = refs[0]
    out_ref = refs[-1]
    wb = refs[1:-1]

    z = x_ref[...]                       # (D, TB) float32, batch on lanes
    idx = 0
    for _c in range(n_couplings):
        h = z
        for li in range(n_layers):
            w = wb[idx][...]             # (out, in) bfloat16 (mask pre-folded)
            b = wb[idx + 1][...]         # (out, 1)  float32 (mask pre-folded)
            idx += 2
            # MXU matmul: bf16 operands, f32 accumulation.
            h = jnp.dot(w, h.astype(jnp.bfloat16),
                        preferred_element_type=jnp.float32) + b
            if li < n_layers - 1:
                # LeakyReLU(0.1) in f32 (VPU; no bf16 dependence -> v5e safe).
                h = jnp.where(h > 0.0, h, 0.1 * h)
        # Mask already folded into the last layer: z_new = z + a(z*m)*(1-m).
        z = z + h
    out_ref[...] = z


# ----------------------------------------------------------------------------
# Parameter construction (mirrors torch.nn.Linear layout: W (out,in), b (out,)).
# ----------------------------------------------------------------------------
def make_mask(input_dim, mask_type):
    m = jnp.zeros((input_dim,), dtype=jnp.float32)
    if mask_type == 0:
        m = m.at[::2].set(1.0)
    elif mask_type == 1:
        m = m.at[1::2].set(1.0)
    return m.reshape(1, -1)


def init_linear(key, fan_in, fan_out):
    # torch.nn.Linear default init: U(-1/sqrt(fan_in), +1/sqrt(fan_in)).
    kw, kb = jax.random.split(key)
    bound = 1.0 / float(fan_in) ** 0.5
    W = jax.random.uniform(kw, (fan_out, fan_in), jnp.float32, -bound, bound)
    b = jax.random.uniform(kb, (fan_out, 1), jnp.float32, -bound, bound)
    return W, b


def init_flow_model(key, input_dim, n_layers, n_couplings, hidden_dim):
    """Returns list of (mask (1,D), [(W (out,in), b (out,1)), ...]) per coupling."""
    params = []
    for c in range(n_couplings):
        mask = make_mask(input_dim, c % 2)
        dims = [input_dim] + [hidden_dim] * (n_layers - 1) + [input_dim]
        layer_weights = []
        for li in range(n_layers):
            key, sub = jax.random.split(key)
            layer_weights.append(init_linear(sub, dims[li], dims[li + 1]))
        params.append((mask, layer_weights))
    return params


# ----------------------------------------------------------------------------
# Wrapper: mask folding, layout transpose, batch tiling, pallas_call.
# ----------------------------------------------------------------------------
def _fold_masks_into_weights(params):
    """Fold the 0/1 masks into the first/last Linear of each coupling layer."""
    flat = []
    flops_per_row = 0
    for mask, layer_weights in params:
        m = mask.reshape(-1)              # (D,)
        inv = 1.0 - m
        n = len(layer_weights)
        for i, (W, b) in enumerate(layer_weights):
            Wk, bk = W, b
            if i == 0:
                Wk = Wk * m[None, :]          # zero masked-out input columns
            if i == n - 1:
                Wk = Wk * inv[:, None]        # zero masked output rows
                bk = bk * inv[:, None]
            flat.append(Wk.astype(jnp.bfloat16))
            flat.append(bk.astype(jnp.float32))
            flops_per_row += 2 * W.shape[0] * W.shape[1]
    return flat, flops_per_row


def _choose_batch_tile(B):
    """Pick a lane-dense batch tile: multiple of 128, <= 2048, minimal padding."""
    b128 = ((max(B, 1) + 127) // 128) * 128
    k = b128 // 128
    tb_mult = 1
    for cand in range(min(16, k), 0, -1):   # largest divisor of k that is <= 16
        if k % cand == 0:
            tb_mult = cand
            break
    return tb_mult * 128, b128


def flow_model_forward(params, x, input_dim):
    """FlowModel.forward: flatten to (-1, input_dim), apply all couplings fused."""
    z = jnp.asarray(x, jnp.float32).reshape(-1, input_dim)
    B, D = z.shape
    TB, B_pad = _choose_batch_tile(B)
    n_couplings = len(params)
    n_layers = len(params[0][1])

    flat, flops_per_row = _fold_masks_into_weights(params)

    # Layout plumbing in the wrapper: pad batch to a multiple of the tile and
    # transpose to (D, B_pad) so batch sits on the lane axis inside the kernel.
    z_pad = jnp.pad(z, ((0, B_pad - B), (0, 0)))
    zT = z_pad.T                                   # (D, B_pad)

    grid = (B_pad // TB,)
    io_spec = pl.BlockSpec((D, TB), lambda i: (0, i))
    w_specs = [pl.BlockSpec(a.shape, lambda i: (0, 0)) for a in flat]

    weight_bytes = sum(int(a.size) * a.dtype.itemsize for a in flat)
    cost = pl.CostEstimate(
        flops=int(flops_per_row) * int(B_pad),
        transcendentals=0,
        bytes_accessed=int(2 * B_pad * D * 4 + weight_bytes),
    )

    kernel = functools.partial(_flow_kernel, n_couplings, n_layers)
    outT = pl.pallas_call(
        kernel,
        out_shape=jax.ShapeDtypeStruct((D, B_pad), jnp.float32),
        grid=grid,
        in_specs=[io_spec] + w_specs,
        out_specs=io_spec,
        compiler_params=pltpu.CompilerParams(
            dimension_semantics=("parallel",)),
        cost_estimate=cost,
    )(zT, *flat)

    return outT.T[:B]                              # (B, D)


# ----------------------------------------------------------------------------
# Pure-JAX references for correctness checking.
#   matmul_dtype=jnp.bfloat16 reproduces the kernel's exact math (bf16 operands,
#   f32 accumulation); jnp.float32 is the full-precision PyTorch semantics.
# ----------------------------------------------------------------------------
def flow_model_reference(params, x, input_dim, matmul_dtype=jnp.float32):
    z = jnp.asarray(x, jnp.float32).reshape(-1, input_dim)
    for mask, layer_weights in params:
        h = z * mask
        n = len(layer_weights)
        for i, (W, b) in enumerate(layer_weights):
            h = jnp.dot(h.astype(matmul_dtype), W.T.astype(matmul_dtype),
                        preferred_element_type=jnp.float32) + b.reshape(1, -1)
            if i < n - 1:
                h = jnp.where(h > 0, h, 0.1 * h)
        z = z + h * (1.0 - mask)
    return z


# TODO(synk): inverse() / inv_flow() (subtractive coupling) not implemented; only
# the forward pass was requested.


if __name__ == "__main__":
    # Small deterministic config consistent with the module's constructor.
    input_dim = 16
    n_layers = 3       # Linear(D,H) -> LeakyReLU -> Linear(H,H) -> LeakyReLU -> Linear(H,D)
    n_couplings = 4
    hidden_dim = 32

    key = jax.random.PRNGKey(0)
    key, pkey, xkey1, xkey2 = jax.random.split(key, 4)

    params = init_flow_model(pkey, input_dim, n_layers, n_couplings, hidden_dim)

    # --- Test 1: small input (2, 4, 16) -> flattened internally to (8, 16). ---
    x1 = jax.random.normal(xkey1, (2, 4, input_dim), dtype=jnp.float32)
    out1 = jax.block_until_ready(flow_model_forward(params, x1, input_dim))
    assert out1.shape == (8, input_dim), out1.shape

    ref1_matched = flow_model_reference(params, x1, input_dim, jnp.bfloat16)
    ref1_f32 = flow_model_reference(params, x1, input_dim, jnp.float32)
    assert jnp.allclose(out1, ref1_matched, atol=1e-3, rtol=1e-3), \
        "mismatch vs bf16-matched reference"
    assert float(jnp.max(jnp.abs(out1 - ref1_f32))) < 0.1, \
        "mismatch vs f32 reference beyond bf16 tolerance"

    # --- Test 2: larger batch to exercise batch padding + multi-block grid. ---
    x2 = jax.random.normal(xkey2, (41, 100, input_dim), dtype=jnp.float32)
    out2 = jax.block_until_ready(flow_model_forward(params, x2, input_dim))
    assert out2.shape == (4100, input_dim), out2.shape

    ref2_matched = flow_model_reference(params, x2, input_dim, jnp.bfloat16)
    assert jnp.allclose(out2, ref2_matched, atol=1e-3, rtol=1e-3), \
        "mismatch vs bf16-matched reference (large batch)"

    print("KERNEL_OK")
</pallas_src>

<mosaic_0001>
module attributes {stable_mosaic.version = 11 : i64} {
  func.func @_flow_kernel(%arg0: i32, %arg1: memref<16x128xf32, #tpu.memory_space<vmem>>, %arg2: memref<32x16xbf16, #tpu.memory_space<vmem>>, %arg3: memref<32x1xf32, #tpu.memory_space<vmem>>, %arg4: memref<32x32xbf16, #tpu.memory_space<vmem>>, %arg5: memref<32x1xf32, #tpu.memory_space<vmem>>, %arg6: memref<16x32xbf16, #tpu.memory_space<vmem>>, %arg7: memref<16x1xf32, #tpu.memory_space<vmem>>, %arg8: memref<32x16xbf16, #tpu.memory_space<vmem>>, %arg9: memref<32x1xf32, #tpu.memory_space<vmem>>, %arg10: memref<32x32xbf16, #tpu.memory_space<vmem>>, %arg11: memref<32x1xf32, #tpu.memory_space<vmem>>, %arg12: memref<16x32xbf16, #tpu.memory_space<vmem>>, %arg13: memref<16x1xf32, #tpu.memory_space<vmem>>, %arg14: memref<32x16xbf16, #tpu.memory_space<vmem>>, %arg15: memref<32x1xf32, #tpu.memory_space<vmem>>, %arg16: memref<32x32xbf16, #tpu.memory_space<vmem>>, %arg17: memref<32x1xf32, #tpu.memory_space<vmem>>, %arg18: memref<16x32xbf16, #tpu.memory_space<vmem>>, %arg19: memref<16x1xf32, #tpu.memory_space<vmem>>, %arg20: memref<32x16xbf16, #tpu.memory_space<vmem>>, %arg21: memref<32x1xf32, #tpu.memory_space<vmem>>, %arg22: memref<32x32xbf16, #tpu.memory_space<vmem>>, %arg23: memref<32x1xf32, #tpu.memory_space<vmem>>, %arg24: memref<16x32xbf16, #tpu.memory_space<vmem>>, %arg25: memref<16x1xf32, #tpu.memory_space<vmem>>, %arg26: memref<16x128xf32, #tpu.memory_space<vmem>>) attributes {dimension_semantics = [#tpu.dimension_semantics<parallel>], iteration_bounds = array<i64: 1>, scalar_prefetch = 0 : i64, scratch_operands = 0 : i64, tpu.core_type = #tpu.core_type<tc>, window_params = [{transform_indices = @transform_0, window_bounds = array<i64: 16, 128>}, {pipeline_mode = #tpu.pipeline_mode<synchronous>, transform_indices = @transform_1, window_bounds = array<i64: 32, 16>}, {pipeline_mode = #tpu.pipeline_mode<synchronous>, transform_indices = @transform_2, window_bounds = array<i64: 32, 1>}, {pipeline_mode = #tpu.pipeline_mode<synchronous>, transform_indices = @transform_3, window_bounds = array<i64: 32, 32>}, {pipeline_mode = #tpu.pipeline_mode<synchronous>, transform_indices = @transform_4, window_bounds = array<i64: 32, 1>}, {pipeline_mode = #tpu.pipeline_mode<synchronous>, transform_indices = @transform_5, window_bounds = array<i64: 16, 32>}, {pipeline_mode = #tpu.pipeline_mode<synchronous>, transform_indices = @transform_6, window_bounds = array<i64: 16, 1>}, {pipeline_mode = #tpu.pipeline_mode<synchronous>, transform_indices = @transform_7, window_bounds = array<i64: 32, 16>}, {pipeline_mode = #tpu.pipeline_mode<synchronous>, transform_indices = @transform_8, window_bounds = array<i64: 32, 1>}, {pipeline_mode = #tpu.pipeline_mode<synchronous>, transform_indices = @transform_9, window_bounds = array<i64: 32, 32>}, {pipeline_mode = #tpu.pipeline_mode<synchronous>, transform_indices = @transform_10, window_bounds = array<i64: 32, 1>}, {pipeline_mode = #tpu.pipeline_mode<synchronous>, transform_indices = @transform_11, window_bounds = array<i64: 16, 32>}, {pipeline_mode = #tpu.pipeline_mode<synchronous>, transform_indices = @transform_12, window_bounds = array<i64: 16, 1>}, {pipeline_mode = #tpu.pipeline_mode<synchronous>, transform_indices = @transform_13, window_bounds = array<i64: 32, 16>}, {pipeline_mode = #tpu.pipeline_mode<synchronous>, transform_indices = @transform_14, window_bounds = array<i64: 32, 1>}, {pipeline_mode = #tpu.pipeline_mode<synchronous>, transform_indices = @transform_15, window_bounds = array<i64: 32, 32>}, {pipeline_mode = #tpu.pipeline_mode<synchronous>, transform_indices = @transform_16, window_bounds = array<i64: 32, 1>}, {pipeline_mode = #tpu.pipeline_mode<synchronous>, transform_indices = @transform_17, window_bounds = array<i64: 16, 32>}, {pipeline_mode = #tpu.pipeline_mode<synchronous>, transform_indices = @transform_18, window_bounds = array<i64: 16, 1>}, {pipeline_mode = #tpu.pipeline_mode<synchronous>, transform_indices = @transform_19, window_bounds = array<i64: 32, 16>}, {pipeline_mode = #tpu.pipeline_mode<synchronous>, transform_indices = @transform_20, window_bounds = array<i64: 32, 1>}, {pipeline_mode = #tpu.pipeline_mode<synchronous>, transform_indices = @transform_21, window_bounds = array<i64: 32, 32>}, {pipeline_mode = #tpu.pipeline_mode<synchronous>, transform_indices = @transform_22, window_bounds = array<i64: 32, 1>}, {pipeline_mode = #tpu.pipeline_mode<synchronous>, transform_indices = @transform_23, window_bounds = array<i64: 16, 32>}, {pipeline_mode = #tpu.pipeline_mode<synchronous>, transform_indices = @transform_24, window_bounds = array<i64: 16, 1>}, {transform_indices = @transform_25, window_bounds = array<i64: 16, 128>}]} {
    %c0 = arith.constant 0 : index
    %c0_0 = arith.constant 0 : index
    %0 = vector.load %arg1[%c0, %c0_0] : memref<16x128xf32, #tpu.memory_space<vmem>>, vector<16x128xf32>
    %c0_1 = arith.constant 0 : index
    %c0_2 = arith.constant 0 : index
    %1 = vector.load %arg2[%c0_1, %c0_2] : memref<32x16xbf16, #tpu.memory_space<vmem>>, vector<32x16xbf16>
    %c0_3 = arith.constant 0 : index
    %c0_4 = arith.constant 0 : index
    %2 = vector.load %arg3[%c0_3, %c0_4] : memref<32x1xf32, #tpu.memory_space<vmem>>, vector<32x1xf32>
    %3 = arith.truncf %0 : vector<16x128xf32> to vector<16x128xbf16>
    %cst = arith.constant dense<0.000000e+00> : vector<32x128xf32>
    %4 = tpu.matmul %1, %3, %cst {dimension_numbers = #tpu.dot_dimension_numbers<[1], [0], [0], [1], [0, 0, 1, 1], [], []>} : vector<32x16xbf16>, vector<16x128xbf16>, vector<32x128xf32> -> vector<32x128xf32>
    %5 = vector.broadcast %2 : vector<32x1xf32> to vector<32x128xf32>
    %6 = arith.addf %4, %5 : vector<32x128xf32>
    %cst_5 = arith.constant 0.000000e+00 : f32
    %7 = vector.broadcast %cst_5 : f32 to vector<32x128xf32>
    %8 = arith.cmpf ogt, %6, %7 : vector<32x128xf32>
    %cst_6 = arith.constant 1.000000e-01 : f32
    %9 = vector.broadcast %cst_6 : f32 to vector<32x128xf32>
    %10 = arith.mulf %9, %6 : vector<32x128xf32>
    %11 = arith.select %8, %6, %10 : vector<32x128xi1>, vector<32x128xf32>
    %c0_7 = arith.constant 0 : index
    %c0_8 = arith.constant 0 : index
    %12 = vector.load %arg4[%c0_7, %c0_8] : memref<32x32xbf16, #tpu.memory_space<vmem>>, vector<32x32xbf16>
    %c0_9 = arith.constant 0 : index
    %c0_10 = arith.constant 0 : index
    %13 = vector.load %arg5[%c0_9, %c0_10] : memref<32x1xf32, #tpu.memory_space<vmem>>, vector<32x1xf32>
    %14 = arith.truncf %11 : vector<32x128xf32> to vector<32x128xbf16>
    %cst_11 = arith.constant dense<0.000000e+00> : vector<32x128xf32>
    %15 = tpu.matmul %12, %14, %cst_11 {dimension_numbers = #tpu.dot_dimension_numbers<[1], [0], [0], [1], [0, 0, 1, 1], [], []>} : vector<32x32xbf16>, vector<32x128xbf16>, vector<32x128xf32> -> vector<32x128xf32>
    %16 = vector.broadcast %13 : vector<32x1xf32> to vector<32x128xf32>
    %17 = arith.addf %15, %16 : vector<32x128xf32>
    %cst_12 = arith.constant 0.000000e+00 : f32
    %18 = vector.broadcast %cst_12 : f32 to vector<32x128xf32>
    %19 = arith.cmpf ogt, %17, %18 : vector<32x128xf32>
    %cst_13 = arith.constant 1.000000e-01 : f32
    %20 = vector.broadcast %cst_13 : f32 to vector<32x128xf32>
    %21 = arith.mulf %20, %17 : vector<32x128xf32>
    %22 = arith.select %19, %17, %21 : vector<32x128xi1>, vector<32x128xf32>
    %c0_14 = arith.constant 0 : index
    %c0_15 = arith.constant 0 : index
    %23 = vector.load %arg6[%c0_14, %c0_15] : memref<16x32xbf16, #tpu.memory_space<vmem>>, vector<16x32xbf16>
    %c0_16 = arith.constant 0 : index
    %c0_17 = arith.constant 0 : index
    %24 = vector.load %arg7[%c0_16, %c0_17] : memref<16x1xf32, #tpu.memory_space<vmem>>, vector<16x1xf32>
    %25 = arith.truncf %22 : vector<32x128xf32> to vector<32x128xbf16>
    %cst_18 = arith.constant dense<0.000000e+00> : vector<16x128xf32>
    %26 = tpu.matmul %23, %25, %cst_18 {dimension_numbers = #tpu.dot_dimension_numbers<[1], [0], [0], [1], [0, 0, 1, 1], [], []>} : vector<16x32xbf16>, vector<32x128xbf16>, vector<16x128xf32> -> vector<16x128xf32>
    %27 = vector.broadcast %24 : vector<16x1xf32> to vector<16x128xf32>
    %28 = arith.addf %26, %27 : vector<16x128xf32>
    %29 = arith.addf %0, %28 : vector<16x128xf32>
    %c0_19 = arith.constant 0 : index
    %c0_20 = arith.constant 0 : index
    %30 = vector.load %arg8[%c0_19, %c0_20] : memref<32x16xbf16, #tpu.memory_space<vmem>>, vector<32x16xbf16>
    %c0_21 = arith.constant 0 : index
    %c0_22 = arith.constant 0 : index
    %31 = vector.load %arg9[%c0_21, %c0_22] : memref<32x1xf32, #tpu.memory_space<vmem>>, vector<32x1xf32>
    %32 = arith.truncf %29 : vector<16x128xf32> to vector<16x128xbf16>
    %cst_23 = arith.constant dense<0.000000e+00> : vector<32x128xf32>
    %33 = tpu.matmul %30, %32, %cst_23 {dimension_numbers = #tpu.dot_dimension_numbers<[1], [0], [0], [1], [0, 0, 1, 1], [], []>} : vector<32x16xbf16>, vector<16x128xbf16>, vector<32x128xf32> -> vector<32x128xf32>
    %34 = vector.broadcast %31 : vector<32x1xf32> to vector<32x128xf32>
    %35 = arith.addf %33, %34 : vector<32x128xf32>
    %cst_24 = arith.constant 0.000000e+00 : f32
    %36 = vector.broadcast %cst_24 : f32 to vector<32x128xf32>
    %37 = arith.cmpf ogt, %35, %36 : vector<32x128xf32>
    %cst_25 = arith.constant 1.000000e-01 : f32
    %38 = vector.broadcast %cst_25 : f32 to vector<32x128xf32>
    %39 = arith.mulf %38, %35 : vector<32x128xf32>
    %40 = arith.select %37, %35, %39 : vector<32x128xi1>, vector<32x128xf32>
    %c0_26 = arith.constant 0 : index
    %c0_27 = arith.constant 0 : index
    %41 = vector.load %arg10[%c0_26, %c0_27] : memref<32x32xbf16, #tpu.memory_space<vmem>>, vector<32x32xbf16>
    %c0_28 = arith.constant 0 : index
    %c0_29 = arith.constant 0 : index
    %42 = vector.load %arg11[%c0_28, %c0_29] : memref<32x1xf32, #tpu.memory_space<vmem>>, vector<32x1xf32>
    %43 = arith.truncf %40 : vector<32x128xf32> to vector<32x128xbf16>
    %cst_30 = arith.constant dense<0.000000e+00> : vector<32x128xf32>
    %44 = tpu.matmul %41, %43, %cst_30 {dimension_numbers = #tpu.dot_dimension_numbers<[1], [0], [0], [1], [0, 0, 1, 1], [], []>} : vector<32x32xbf16>, vector<32x128xbf16>, vector<32x128xf32> -> vector<32x128xf32>
    %45 = vector.broadcast %42 : vector<32x1xf32> to vector<32x128xf32>
    %46 = arith.addf %44, %45 : vector<32x128xf32>
    %cst_31 = arith.constant 0.000000e+00 : f32
    %47 = vector.broadcast %cst_31 : f32 to vector<32x128xf32>
    %48 = arith.cmpf ogt, %46, %47 : vector<32x128xf32>
    %cst_32 = arith.constant 1.000000e-01 : f32
    %49 = vector.broadcast %cst_32 : f32 to vector<32x128xf32>
    %50 = arith.mulf %49, %46 : vector<32x128xf32>
    %51 = arith.select %48, %46, %50 : vector<32x128xi1>, vector<32x128xf32>
    %c0_33 = arith.constant 0 : index
    %c0_34 = arith.constant 0 : index
    %52 = vector.load %arg12[%c0_33, %c0_34] : memref<16x32xbf16, #tpu.memory_space<vmem>>, vector<16x32xbf16>
    %c0_35 = arith.constant 0 : index
    %c0_36 = arith.constant 0 : index
    %53 = vector.load %arg13[%c0_35, %c0_36] : memref<16x1xf32, #tpu.memory_space<vmem>>, vector<16x1xf32>
    %54 = arith.truncf %51 : vector<32x128xf32> to vector<32x128xbf16>
    %cst_37 = arith.constant dense<0.000000e+00> : vector<16x128xf32>
    %55 = tpu.matmul %52, %54, %cst_37 {dimension_numbers = #tpu.dot_dimension_numbers<[1], [0], [0], [1], [0, 0, 1, 1], [], []>} : vector<16x32xbf16>, vector<32x128xbf16>, vector<16x128xf32> -> vector<16x128xf32>
    %56 = vector.broadcast %53 : vector<16x1xf32> to vector<16x128xf32>
    %57 = arith.addf %55, %56 : vector<16x128xf32>
    %58 = arith.addf %29, %57 : vector<16x128xf32>
    %c0_38 = arith.constant 0 : index
    %c0_39 = arith.constant 0 : index
    %59 = vector.load %arg14[%c0_38, %c0_39] : memref<32x16xbf16, #tpu.memory_space<vmem>>, vector<32x16xbf16>
    %c0_40 = arith.constant 0 : index
    %c0_41 = arith.constant 0 : index
    %60 = vector.load %arg15[%c0_40, %c0_41] : memref<32x1xf32, #tpu.memory_space<vmem>>, vector<32x1xf32>
    %61 = arith.truncf %58 : vector<16x128xf32> to vector<16x128xbf16>
    %cst_42 = arith.constant dense<0.000000e+00> : vector<32x128xf32>
    %62 = tpu.matmul %59, %61, %cst_42 {dimension_numbers = #tpu.dot_dimension_numbers<[1], [0], [0], [1], [0, 0, 1, 1], [], []>} : vector<32x16xbf16>, vector<16x128xbf16>, vector<32x128xf32> -> vector<32x128xf32>
    %63 = vector.broadcast %60 : vector<32x1xf32> to vector<32x128xf32>
    %64 = arith.addf %62, %63 : vector<32x128xf32>
    %cst_43 = arith.constant 0.000000e+00 : f32
    %65 = vector.broadcast %cst_43 : f32 to vector<32x128xf32>
    %66 = arith.cmpf ogt, %64, %65 : vector<32x128xf32>
    %cst_44 = arith.constant 1.000000e-01 : f32
    %67 = vector.broadcast %cst_44 : f32 to vector<32x128xf32>
    %68 = arith.mulf %67, %64 : vector<32x128xf32>
    %69 = arith.select %66, %64, %68 : vector<32x128xi1>, vector<32x128xf32>
    %c0_45 = arith.constant 0 : index
    %c0_46 = arith.constant 0 : index
    %70 = vector.load %arg16[%c0_45, %c0_46] : memref<32x32xbf16, #tpu.memory_space<vmem>>, vector<32x32xbf16>
    %c0_47 = arith.constant 0 : index
    %c0_48 = arith.constant 0 : index
    %71 = vector.load %arg17[%c0_47, %c0_48] : memref<32x1xf32, #tpu.memory_space<vmem>>, vector<32x1xf32>
    %72 = arith.truncf %69 : vector<32x128xf32> to vector<32x128xbf16>
    %cst_49 = arith.constant dense<0.000000e+00> : vector<32x128xf32>
    %73 = tpu.matmul %70, %72, %cst_49 {dimension_numbers = #tpu.dot_dimension_numbers<[1], [0], [0], [1], [0, 0, 1, 1], [], []>} : vector<32x32xbf16>, vector<32x128xbf16>, vector<32x128xf32> -> vector<32x128xf32>
    %74 = vector.broadcast %71 : vector<32x1xf32> to vector<32x128xf32>
    %75 = arith.addf %73, %74 : vector<32x128xf32>
    %cst_50 = arith.constant 0.000000e+00 : f32
    %76 = vector.broadcast %cst_50 : f32 to vector<32x128xf32>
    %77 = arith.cmpf ogt, %75, %76 : vector<32x128xf32>
    %cst_51 = arith.constant 1.000000e-01 : f32
    %78 = vector.broadcast %cst_51 : f32 to vector<32x128xf32>
    %79 = arith.mulf %78, %75 : vector<32x128xf32>
    %80 = arith.select %77, %75, %79 : vector<32x128xi1>, vector<32x128xf32>
    %c0_52 = arith.constant 0 : index
    %c0_53 = arith.constant 0 : index
    %81 = vector.load %arg18[%c0_52, %c0_53] : memref<16x32xbf16, #tpu.memory_space<vmem>>, vector<16x32xbf16>
    %c0_54 = arith.constant 0 : index
    %c0_55 = arith.constant 0 : index
    %82 = vector.load %arg19[%c0_54, %c0_55] : memref<16x1xf32, #tpu.memory_space<vmem>>, vector<16x1xf32>
    %83 = arith.truncf %80 : vector<32x128xf32> to vector<32x128xbf16>
    %cst_56 = arith.constant dense<0.000000e+00> : vector<16x128xf32>
    %84 = tpu.matmul %81, %83, %cst_56 {dimension_numbers = #tpu.dot_dimension_numbers<[1], [0], [0], [1], [0, 0, 1, 1], [], []>} : vector<16x32xbf16>, vector<32x128xbf16>, vector<16x128xf32> -> vector<16x128xf32>
    %85 = vector.broadcast %82 : vector<16x1xf32> to vector<16x128xf32>
    %86 = arith.addf %84, %85 : vector<16x128xf32>
    %87 = arith.addf %58, %86 : vector<16x128xf32>
    %c0_57 = arith.constant 0 : index
    %c0_58 = arith.constant 0 : index
    %88 = vector.load %arg20[%c0_57, %c0_58] : memref<32x16xbf16, #tpu.memory_space<vmem>>, vector<32x16xbf16>
    %c0_59 = arith.constant 0 : index
    %c0_60 = arith.constant 0 : index
    %89 = vector.load %arg21[%c0_59, %c0_60] : memref<32x1xf32, #tpu.memory_space<vmem>>, vector<32x1xf32>
    %90 = arith.truncf %87 : vector<16x128xf32> to vector<16x128xbf16>
    %cst_61 = arith.constant dense<0.000000e+00> : vector<32x128xf32>
    %91 = tpu.matmul %88, %90, %cst_61 {dimension_numbers = #tpu.dot_dimension_numbers<[1], [0], [0], [1], [0, 0, 1, 1], [], []>} : vector<32x16xbf16>, vector<16x128xbf16>, vector<32x128xf32> -> vector<32x128xf32>
    %92 = vector.broadcast %89 : vector<32x1xf32> to vector<32x128xf32>
    %93 = arith.addf %91, %92 : vector<32x128xf32>
    %cst_62 = arith.constant 0.000000e+00 : f32
    %94 = vector.broadcast %cst_62 : f32 to vector<32x128xf32>
    %95 = arith.cmpf ogt, %93, %94 : vector<32x128xf32>
    %cst_63 = arith.constant 1.000000e-01 : f32
    %96 = vector.broadcast %cst_63 : f32 to vector<32x128xf32>
    %97 = arith.mulf %96, %93 : vector<32x128xf32>
    %98 = arith.select %95, %93, %97 : vector<32x128xi1>, vector<32x128xf32>
    %c0_64 = arith.constant 0 : index
    %c0_65 = arith.constant 0 : index
    %99 = vector.load %arg22[%c0_64, %c0_65] : memref<32x32xbf16, #tpu.memory_space<vmem>>, vector<32x32xbf16>
    %c0_66 = arith.constant 0 : index
    %c0_67 = arith.constant 0 : index
    %100 = vector.load %arg23[%c0_66, %c0_67] : memref<32x1xf32, #tpu.memory_space<vmem>>, vector<32x1xf32>
    %101 = arith.truncf %98 : vector<32x128xf32> to vector<32x128xbf16>
    %cst_68 = arith.constant dense<0.000000e+00> : vector<32x128xf32>
    %102 = tpu.matmul %99, %101, %cst_68 {dimension_numbers = #tpu.dot_dimension_numbers<[1], [0], [0], [1], [0, 0, 1, 1], [], []>} : vector<32x32xbf16>, vector<32x128xbf16>, vector<32x128xf32> -> vector<32x128xf32>
    %103 = vector.broadcast %100 : vector<32x1xf32> to vector<32x128xf32>
    %104 = arith.addf %102, %103 : vector<32x128xf32>
    %cst_69 = arith.constant 0.000000e+00 : f32
    %105 = vector.broadcast %cst_69 : f32 to vector<32x128xf32>
    %106 = arith.cmpf ogt, %104, %105 : vector<32x128xf32>
    %cst_70 = arith.constant 1.000000e-01 : f32
    %107 = vector.broadcast %cst_70 : f32 to vector<32x128xf32>
    %108 = arith.mulf %107, %104 : vector<32x128xf32>
    %109 = arith.select %106, %104, %108 : vector<32x128xi1>, vector<32x128xf32>
    %c0_71 = arith.constant 0 : index
    %c0_72 = arith.constant 0 : index
    %110 = vector.load %arg24[%c0_71, %c0_72] : memref<16x32xbf16, #tpu.memory_space<vmem>>, vector<16x32xbf16>
    %c0_73 = arith.constant 0 : index
    %c0_74 = arith.constant 0 : index
    %111 = vector.load %arg25[%c0_73, %c0_74] : memref<16x1xf32, #tpu.memory_space<vmem>>, vector<16x1xf32>
    %112 = arith.truncf %109 : vector<32x128xf32> to vector<32x128xbf16>
    %cst_75 = arith.constant dense<0.000000e+00> : vector<16x128xf32>
    %113 = tpu.matmul %110, %112, %cst_75 {dimension_numbers = #tpu.dot_dimension_numbers<[1], [0], [0], [1], [0, 0, 1, 1], [], []>} : vector<16x32xbf16>, vector<32x128xbf16>, vector<16x128xf32> -> vector<16x128xf32>
    %114 = vector.broadcast %111 : vector<16x1xf32> to vector<16x128xf32>
    %115 = arith.addf %113, %114 : vector<16x128xf32>
    %116 = arith.addf %87, %115 : vector<16x128xf32>
    %c0_76 = arith.constant 0 : index
    %c0_77 = arith.constant 0 : index
    %117 = vector.load %arg26[%c0_76, %c0_77] : memref<16x128xf32, #tpu.memory_space<vmem>>, vector<16x128xf32>
    tpu.vector_store %arg26[%c0_76, %c0_77], %116 {strides = array<i32>} : memref<16x128xf32, #tpu.memory_space<vmem>>, vector<16x128xf32>,
    return
  }
  func.func @transform_0(%arg0: i32) -> (i32, i32) {
    %c0_i32 = arith.constant 0 : i32
    %c0_i32_0 = arith.constant 0 : i32
    return %c0_i32, %arg0 : i32, i32
  }
  func.func @transform_1(%arg0: i32) -> (i32, i32) {
    %c0_i32 = arith.constant 0 : i32
    %c0_i32_0 = arith.constant 0 : i32
    %c0_i32_1 = arith.constant 0 : i32
    return %c0_i32, %c0_i32_0 : i32, i32
  }
  func.func @transform_2(%arg0: i32) -> (i32, i32) {
    %c0_i32 = arith.constant 0 : i32
    %c0_i32_0 = arith.constant 0 : i32
    %c0_i32_1 = arith.constant 0 : i32
    return %c0_i32, %c0_i32_0 : i32, i32
  }
  func.func @transform_3(%arg0: i32) -> (i32, i32) {
    %c0_i32 = arith.constant 0 : i32
    %c0_i32_0 = arith.constant 0 : i32
    %c0_i32_1 = arith.constant 0 : i32
    return %c0_i32, %c0_i32_0 : i32, i32
  }
  func.func @transform_4(%arg0: i32) -> (i32, i32) {
    %c0_i32 = arith.constant 0 : i32
    %c0_i32_0 = arith.constant 0 : i32
    %c0_i32_1 = arith.constant 0 : i32
    return %c0_i32, %c0_i32_0 : i32, i32
  }
  func.func @transform_5(%arg0: i32) -> (i32, i32) {
    %c0_i32 = arith.constant 0 : i32
    %c0_i32_0 = arith.constant 0 : i32
    %c0_i32_1 = arith.constant 0 : i32
    return %c0_i32, %c0_i32_0 : i32, i32
  }
  func.func @transform_6(%arg0: i32) -> (i32, i32) {
    %c0_i32 = arith.constant 0 : i32
    %c0_i32_0 = arith.constant 0 : i32
    %c0_i32_1 = arith.constant 0 : i32
    return %c0_i32, %c0_i32_0 : i32, i32
  }
  func.func @transform_7(%arg0: i32) -> (i32, i32) {
    %c0_i32 = arith.constant 0 : i32
    %c0_i32_0 = arith.constant 0 : i32
    %c0_i32_1 = arith.constant 0 : i32
    return %c0_i32, %c0_i32_0 : i32, i32
  }
  func.func @transform_8(%arg0: i32) -> (i32, i32) {
    %c0_i32 = arith.constant 0 : i32
    %c0_i32_0 = arith.constant 0 : i32
    %c0_i32_1 = arith.constant 0 : i32
    return %c0_i32, %c0_i32_0 : i32, i32
  }
  func.func @transform_9(%arg0: i32) -> (i32, i32) {
    %c0_i32 = arith.constant 0 : i32
    %c0_i32_0 = arith.constant 0 : i32
    %c0_i32_1 = arith.constant 0 : i32
    return %c0_i32, %c0_i32_0 : i32, i32
  }
  func.func @transform_10(%arg0: i32) -> (i32, i32) {
    %c0_i32 = arith.constant 0 : i32
    %c0_i32_0 = arith.constant 0 : i32
    %c0_i32_1 = arith.constant 0 : i32
    return %c0_i32, %c0_i32_0 : i32, i32
  }
  func.func @transform_11(%arg0: i32) -> (i32, i32) {
    %c0_i32 = arith.constant 0 : i32
    %c0_i32_0 = arith.constant 0 : i32
    %c0_i32_1 = arith.constant 0 : i32
    return %c0_i32, %c0_i32_0 : i32, i32
  }
  func.func @transform_12(%arg0: i32) -> (i32, i32) {
    %c0_i32 = arith.constant 0 : i32
    %c0_i32_0 = arith.constant 0 : i32
    %c0_i32_1 = arith.constant 0 : i32
    return %c0_i32, %c0_i32_0 : i32, i32
  }
  func.func @transform_13(%arg0: i32) -> (i32, i32) {
    %c0_i32 = arith.constant 0 : i32
    %c0_i32_0 = arith.constant 0 : i32
    %c0_i32_1 = arith.constant 0 : i32
    return %c0_i32, %c0_i32_0 : i32, i32
  }
  func.func @transform_14(%arg0: i32) -> (i32, i32) {
    %c0_i32 = arith.constant 0 : i32
    %c0_i32_0 = arith.constant 0 : i32
    %c0_i32_1 = arith.constant 0 : i32
    return %c0_i32, %c0_i32_0 : i32, i32
  }
  func.func @transform_15(%arg0: i32) -> (i32, i32) {
    %c0_i32 = arith.constant 0 : i32
    %c0_i32_0 = arith.constant 0 : i32
    %c0_i32_1 = arith.constant 0 : i32
    return %c0_i32, %c0_i32_0 : i32, i32
  }
  func.func @transform_16(%arg0: i32) -> (i32, i32) {
    %c0_i32 = arith.constant 0 : i32
    %c0_i32_0 = arith.constant 0 : i32
    %c0_i32_1 = arith.constant 0 : i32
    return %c0_i32, %c0_i32_0 : i32, i32
  }
  func.func @transform_17(%arg0: i32) -> (i32, i32) {
    %c0_i32 = arith.constant 0 : i32
    %c0_i32_0 = arith.constant 0 : i32
    %c0_i32_1 = arith.constant 0 : i32
    return %c0_i32, %c0_i32_0 : i32, i32
  }
  func.func @transform_18(%arg0: i32) -> (i32, i32) {
    %c0_i32 = arith.constant 0 : i32
    %c0_i32_0 = arith.constant 0 : i32
    %c0_i32_1 = arith.constant 0 : i32
    return %c0_i32, %c0_i32_0 : i32, i32
  }
  func.func @transform_19(%arg0: i32) -> (i32, i32) {
    %c0_i32 = arith.constant 0 : i32
    %c0_i32_0 = arith.constant 0 : i32
    %c0_i32_1 = arith.constant 0 : i32
    return %c0_i32, %c0_i32_0 : i32, i32
  }
  func.func @transform_20(%arg0: i32) -> (i32, i32) {
    %c0_i32 = arith.constant 0 : i32
    %c0_i32_0 = arith.constant 0 : i32
    %c0_i32_1 = arith.constant 0 : i32
    return %c0_i32, %c0_i32_0 : i32, i32
  }
  func.func @transform_21(%arg0: i32) -> (i32, i32) {
    %c0_i32 = arith.constant 0 : i32
    %c0_i32_0 = arith.constant 0 : i32
    %c0_i32_1 = arith.constant 0 : i32
    return %c0_i32, %c0_i32_0 : i32, i32
  }
  func.func @transform_22(%arg0: i32) -> (i32, i32) {
    %c0_i32 = arith.constant 0 : i32
    %c0_i32_0 = arith.constant 0 : i32
    %c0_i32_1 = arith.constant 0 : i32
    return %c0_i32, %c0_i32_0 : i32, i32
  }
  func.func @transform_23(%arg0: i32) -> (i32, i32) {
    %c0_i32 = arith.constant 0 : i32
    %c0_i32_0 = arith.constant 0 : i32
    %c0_i32_1 = arith.constant 0 : i32
    return %c0_i32, %c0_i32_0 : i32, i32
  }
  func.func @transform_24(%arg0: i32) -> (i32, i32) {
    %c0_i32 = arith.constant 0 : i32
    %c0_i32_0 = arith.constant 0 : i32
    %c0_i32_1 = arith.constant 0 : i32
    return %c0_i32, %c0_i32_0 : i32, i32
  }
  func.func @transform_25(%arg0: i32) -> (i32, i32) {
    %c0_i32 = arith.constant 0 : i32
    %c0_i32_0 = arith.constant 0 : i32
    return %c0_i32, %arg0 : i32, i32
  }
}

</mosaic_0001>

<bundles_post_ra>
// kernel: tpu_custom_call.1
= control target key start
LH: loop header
LB: loop body
LE: loop exit
PB: predicated region body
PF: predicated region fallthrough
CT: control target
= control target key end

     0   :  { %s1835_s0 = inlined_call_operand.vmem [shape: f32[16,128], index: 0, kind: input, shape index: {}]   ;;  %s1836_s1 = inlined_call_operand.vmem [shape: bf16[32,16], index: 1, kind: input, shape index: {}]   ;;  %s1837_s2 = inlined_call_operand.vmem [shape: f32[32,1], index: 2, kind: input, shape index: {}]   ;;  %s1838_s3 = inlined_call_operand.vmem [shape: bf16[32,32], index: 3, kind: input, shape index: {}]   ;;  %s1839_s4 = inlined_call_operand.vmem [shape: f32[32,1], index: 4, kind: input, shape index: {}]   ;;  %s1840_s5 = inlined_call_operand.vmem [shape: bf16[16,32], index: 5, kind: input, shape index: {}]   ;;  %s1841_s6 = inlined_call_operand.vmem [shape: f32[16,1], index: 6, kind: input, shape index: {}]   ;;  %s1842_s7 = inlined_call_operand.vmem [shape: bf16[32,16], index: 7, kind: input, shape index: {}]   ;;  %s1843_s8 = inlined_call_operand.vmem [shape: f32[32,1], index: 8, kind: input, shape index: {}]   ;;  %s1844_s9 = inlined_call_operand.vmem [shape: bf16[32,32], index: 9, kind: input, shape index: {}]   ;;  %s1845_s10 = inlined_call_operand.vmem [shape: f32[32,1], index: 10, kind: input, shape index: {}]   ;;  %s1846_s11 = inlined_call_operand.vmem [shape: bf16[16,32], index: 11, kind: input, shape index: {}]   ;;  %s1847_s12 = inlined_call_operand.vmem [shape: f32[16,1], index: 12, kind: input, shape index: {}]   ;;  %s1848_s13 = inlined_call_operand.vmem [shape: bf16[32,16], index: 13, kind: input, shape index: {}]   ;;  %s1849_s14 = inlined_call_operand.vmem [shape: f32[32,1], index: 14, kind: input, shape index: {}]   ;;  %s1850_s15 = inlined_call_operand.vmem [shape: bf16[32,32], index: 15, kind: input, shape index: {}]   ;;  %s1851_s16 = inlined_call_operand.vmem [shape: f32[32,1], index: 16, kind: input, shape index: {}]   ;;  %s1852_s17 = inlined_call_operand.vmem [shape: bf16[16,32], index: 17, kind: input, shape index: {}]   ;;  %s1853_s18 = inlined_call_operand.vmem [shape: f32[16,1], index: 18, kind: input, shape index: {}]   ;;  %s1854_s19 = inlined_call_operand.vmem [shape: bf16[32,16], index: 19, kind: input, shape index: {}]   ;;  %s1855_s20 = inlined_call_operand.vmem [shape: f32[32,1], index: 20, kind: input, shape index: {}]   ;;  %s1856_s21 = inlined_call_operand.vmem [shape: bf16[32,32], index: 21, kind: input, shape index: {}]   ;;  %s1857_s22 = inlined_call_operand.vmem [shape: f32[32,1], index: 22, kind: input, shape index: {}]   ;;  %s1858_s23 = inlined_call_operand.vmem [shape: bf16[16,32], index: 23, kind: input, shape index: {}]   ;;  %s1859_s24 = inlined_call_operand.vmem [shape: f32[16,1], index: 24, kind: input, shape index: {}]   ;;  %s1860_s25 = inlined_call_operand.hbm [shape: f32[16,128], index: 25, kind: output, shape index: {}]  }
   0x1   :  { %1871 = sst [smem:[#allocation5_spill]] %s1835_s0 }
   0x2   :  { %1872 = sst [smem:[#allocation6_spill]] %s1836_s1 }
   0x3   :  { %1873 = sst [smem:[#allocation7_spill]] %s1837_s2 }
   0x4   :  { %1874 = sst [smem:[#allocation8_spill]] %s1838_s3 }
   0x5   :  { %1875 = sst [smem:[#allocation9_spill]] %s1839_s4 }
   0x6   :  { %1876 = sst [smem:[#allocation10_spill]] %s1840_s5 }
   0x7   :  { %1877 = sst [smem:[#allocation11_spill]] %s1841_s6 }
   0x8   :  { %1878 = sst [smem:[#allocation12_spill]] %s1842_s7 }
   0x9   :  { %1879 = sst [smem:[#allocation13_spill]] %s1843_s8 }
   0xa   :  { %1880 = sst [smem:[#allocation14_spill]] %s1844_s9 }
   0xb   :  { %1881 = sst [smem:[#allocation15_spill]] %s1854_s19 }
   0xc   :  { %s1882_s6 = sld [smem:[#allocation7_spill]]  ;;  %v1442_v3 = vmov 0   ;;  %vm123_vm0 = vcmask 130048   ;;  %v478_v20 = vld [vmem:[%s1845_s10 + $0x10] sm:$0xff]  ;;  %v479_v21 = vld [vmem:[%s1845_s10 + $0x18] sm:$0xff] }
   0xd   :  { %s1883_s19 = sld [smem:[#allocation5_spill]]  ;;  %1398 = vset.pattern.permute.xlu0 %v1442_v3  ;;  %1399 = vset.pattern.permute.xlu1 %v1442_v3 }
   0xe   :  { %s1884_s9 = sld [smem:[#allocation6_spill]] }
   0xf   :  { %s1885_s3 = sld [smem:[#allocation9_spill]] }
  0x10   :  { %s1887_s30 = sld [smem:[#allocation13_spill]] }
  0x12   :  { %v90_v0 = vld [vmem:[%s1882_s6 + $0x10] sm:$0xff]  ;;  %v88_v5 = vld [vmem:[%s1882_s6] sm:$0xff]  ;;  %v91_v6 = vld [vmem:[%s1882_s6 + $0x18] sm:$0xff] }
  0x13   :  { %v1584_v1 = vld [vmem:[%s1883_s19] sm:$0xff]  ;;  %v1589_v2 = vld [vmem:[%s1883_s19 + $0x8] sm:$0xff]  ;;  %105 = vperm.xlu0 %1398, %v90_v0   ;;  %95 = vperm.xlu1 %1399, %v88_v5  }
  0x14   :  { %v92_v4 = vpack.c.bf16 %v1589_v2, %v1584_v1  ;;  %v1400_v7 = vld [vmem:[%s1884_s9] sm:$0xff]   ;;  %v1401_v8 = vld [vmem:[%s1884_s9 + $0x8] sm:$0xff]   ;;  %s1886_s9 = sld [smem:[#allocation11_spill]] }
  0x15   :  { %v89_v9 = vld [vmem:[%s1882_s6 + $0x8] sm:$0xff]  ;;  %1306 = vmatprep.mubr.msk.bf16.mxu0 %vm123_vm0, %v1400_v7  ;;  %v197_v10 = vld [vmem:[%s1885_s3 + $0x10] sm:$0xff]  ;;  %v198_v11 = vld [vmem:[%s1885_s3 + $0x18] sm:$0xff] }
  0x16   :  { %1304 = vmatprep.subr.bf16.mxu0 %v92_v4  ;;  %v195_v12 = vld [vmem:[%s1885_s3] sm:$0xff]  ;;  %v196_v13 = vld [vmem:[%s1885_s3 + $0x8] sm:$0xff]  ;;  %v372_v16 = vld [vmem:[%s1887_s30 + $0x10] sm:$0xff] }
  0x17   :  { %1305 = vmatpush3.bf16.msra.mxu0 %v92_v4  ;;  %110 = vperm.xlu0 %1398, %v91_v6   ;;  %v373_v17 = vld [vmem:[%s1887_s30 + $0x18] sm:$0xff]  ;;  %v370_v18 = vld [vmem:[%s1887_s30] sm:$0xff]  ;;  %v371_v19 = vld [vmem:[%s1887_s30 + $0x8] sm:$0xff] }
  0x18   :  { %100 = vperm.xlu1 %1399, %v89_v9  }
  0x1a   :  { %1307 = vmatmul.mubr.msk.bf16.vlgmr.msra.gmra.mxu0 %vm123_vm0, %v1401_v8  ;;  %v301_v14 = vld [vmem:[%s1886_s9] sm:$0xff]  ;;  %v302_v15 = vld [vmem:[%s1886_s9 + $0x8] sm:$0xff] }
  0x1b   :  { %213 = vperm.xlu0 %1398, %v197_v10  }
  0x1c   :  { %218 = vperm.xlu1 %1399, %v198_v11  }
  0x1f   :  { %203 = vperm.xlu0 %1398, %v195_v12  }
  0x20   :  { %208 = vperm.xlu1 %1399, %v196_v13  }
  0x23   :  { %307 = vperm.xlu0 %1398, %v301_v14  }
  0x24   :  { %312 = vperm.xlu1 %1399, %v302_v15  }
  0x27   :  { %387 = vperm.xlu0 %1398, %v372_v16  }
  0x28   :  { %392 = vperm.xlu1 %1399, %v373_v17  }
  0x2b   :  { %377 = vperm.xlu0 %1398, %v370_v18  }
  0x2c   :  { %382 = vperm.xlu1 %1399, %v371_v19  }
  0x2d   :  { %30 = vsyncpa [#allocation3], 0  ;;  %v476_v22 = vld [vmem:[%s1845_s10] sm:$0xff]  ;;  %v477_v23 = vld [vmem:[%s1845_s10 + $0x8] sm:$0xff]  ;;  %s1888_s1 = sld [smem:[#allocation8_spill]]  ;;  %vm231_vm1 = vcmask 261120  }
  0x2e   :  { %v581_v24 = vld [vmem:[%s1847_s12] sm:$0xff]  ;;  %v582_v25 = vld [vmem:[%s1847_s12 + $0x8] sm:$0xff]  ;;  %v652_v26 = vld [vmem:[%s1849_s14 + $0x10] sm:$0xff]  ;;  %v1443_v8 = vmov 0.0   ;;  %vm1444_vm6 = vmmov 0   ;;  %s1889_s10 = sld [smem:[#allocation10_spill]] }
  0x2f   :  { %494 = vperm.xlu0 %1398, %v478_v20   ;;  %v653_v27 = vld [vmem:[%s1849_s14 + $0x18] sm:$0xff]  ;;  %v650_v28 = vld [vmem:[%s1849_s14] sm:$0xff]  ;;  %v651_v29 = vld [vmem:[%s1849_s14 + $0x8] sm:$0xff]  ;;  %1318 = vmatprep.subr.bf16.mxu0 %v1443_v8  ;;  %s1890_s4 = sld [smem:[#allocation12_spill]] }
  0x30   :  { %499 = vperm.xlu1 %1399, %v479_v21   ;;  %v758_v30 = vld [vmem:[%s1851_s16 + $0x10] sm:$0xff]  ;;  %v759_v31 = vld [vmem:[%s1851_s16 + $0x18] sm:$0xff]  ;;  %v756_v32 = vld [vmem:[%s1851_s16] sm:$0xff]  ;;  %1322 = vmatprep.mubr.msk.bf16.mxu0 %vm1444_vm6, %v1443_v8  ;;  %s1891_s9 = sld [smem:[#allocation14_spill]] }
  0x31   :  { %v757_v33 = vld [vmem:[%s1851_s16 + $0x8] sm:$0xff]  ;;  %v861_v34 = vld [vmem:[%s1853_s18] sm:$0xff]  ;;  %v932_v36 = vld [vmem:[%s1855_s20 + $0x10] sm:$0xff]  ;;  %s1892_s8 = sld [smem:[#allocation15_spill]] }
  0x32   :  { %v862_v35 = vld [vmem:[%s1853_s18 + $0x8] sm:$0xff]  ;;  %v933_v37 = vld [vmem:[%s1855_s20 + $0x18] sm:$0xff]  ;;  %v930_v38 = vld [vmem:[%s1855_s20] sm:$0xff]  ;;  %s1445_s18 = smov [#allocation2]  }
  0x33   :  { %484 = vperm.xlu0 %1398, %v476_v22   ;;  %v931_v39 = vld [vmem:[%s1855_s20 + $0x8] sm:$0xff]  ;;  %v1038_v40 = vld [vmem:[%s1857_s22 + $0x10] sm:$0xff]  ;;  %v1039_v41 = vld [vmem:[%s1857_s22 + $0x18] sm:$0xff]  ;;  %s1213_s12 = sshll.u32 %s1445_s18, 4  ;;  %s1214_s12 = int_to_ptr.vmem [resolvable:$true] %s1213_s12 }
  0x34   :  { %489 = vperm.xlu1 %1399, %v477_v23   ;;  %v1036_v42 = vld [vmem:[%s1857_s22] sm:$0xff]  ;;  %v1037_v43 = vld [vmem:[%s1857_s22 + $0x8] sm:$0xff]  ;;  %p1425_p1 = scmp.lt.s32.totalorder %s1214_s12, %s1214_s12 }
  0x35   :  { %v1141_v44 = vld [vmem:[%s1859_s24] sm:$0xff]  ;;  %v1142_v45 = vld [vmem:[%s1859_s24 + $0x8] sm:$0xff] }
  0x36   :  { %v1402_v46 = vld [vmem:[%s1888_s1] sm:$0xff]   ;;  %v1403_v7 = vld [vmem:[%s1888_s1 + $0x8] sm:$0xff]  }
  0x37   :  { %587 = vperm.xlu0 %1398, %v581_v24   ;;  %1314 = vmatprep.mubr.msk.bf16.mxu1 %vm231_vm1, %v1402_v46 }
  0x38   :  { %592 = vperm.xlu1 %1399, %v582_v25  }
  0x3b   :  { %667 = vperm.xlu0 %1398, %v652_v26  }
  0x3c   :  { %672 = vperm.xlu1 %1399, %v653_v27  }
  0x3f   :  { %657 = vperm.xlu0 %1398, %v650_v28  }
  0x40   :  { %662 = vperm.xlu1 %1399, %v651_v29  }
  0x43   :  { %774 = vperm.xlu0 %1398, %v758_v30  }
  0x44   :  { %779 = vperm.xlu1 %1399, %v759_v31   ;;  %v1404_v31 = vld [vmem:[%s1889_s10] sm:$0xff]  }
  0x47   :  { %764 = vperm.xlu0 %1398, %v756_v32   ;;  %v1405_v32 = vld [vmem:[%s1890_s4] sm:$0xff]  }
  0x48   :  { %769 = vperm.xlu1 %1399, %v757_v33  }
  0x4b   :  { %867 = vperm.xlu0 %1398, %v861_v34  }
  0x4c   :  { %872 = vperm.xlu1 %1399, %v862_v35  }
  0x4f   :  { %947 = vperm.xlu0 %1398, %v932_v36  }
  0x50   :  { %952 = vperm.xlu1 %1399, %v933_v37  }
  0x53   :  { %937 = vperm.xlu0 %1398, %v930_v38  }
  0x54   :  { %942 = vperm.xlu1 %1399, %v931_v39  }
  0x57   :  { %1054 = vperm.xlu0 %1398, %v1038_v40  }
  0x58   :  { %1059 = vperm.xlu1 %1399, %v1039_v41  }
  0x5b   :  { %1044 = vperm.xlu0 %1398, %v1036_v42  }
  0x5c   :  { %1049 = vperm.xlu1 %1399, %v1037_v43  }
  0x5f   :  { %1147 = vperm.xlu0 %1398, %v1141_v44   ;;  %v1406_v44 = vld [vmem:[%s1890_s4 + $0x8] sm:$0xff]  }
  0x60   :  { %1152 = vperm.xlu1 %1399, %v1142_v45  }
  0x8e   :  { %v106_v47 = vpop.permute.xlu0 %105  ;;  %v96_v48 = vpop.permute.xlu1 %95 }
  0x92   :  { %v111_v53 = vpop.permute.xlu0 %110 }
  0x93   :  { %v101_v57 = vpop.permute.xlu1 %100 }
  0x96   :  { %v214_v9 = vpop.permute.xlu0 %213 }
  0x97   :  { %v219_v10 = vpop.permute.xlu1 %218 }
  0x9a   :  { %v204_v14 = vpop.permute.xlu0 %203 }
  0x9b   :  { %v209_v19 = vpop.permute.xlu1 %208 }
  0x9e   :  { %v308_v34 = vpop.permute.xlu0 %307 }
  0x9f   :  { %v313_v37 = vpop.permute.xlu1 %312 }
  0xa3   :  { %v393_v45 = vpop.permute.xlu1 %392 }
  0xda   :  { %v1308_v49 = vpop.f32.mrf.mxu0 }
  0xdb   :  { %v173_v50 = vadd.f32 %v1308_v49, %v106_v47 }
  0xdc   :  { %v164_v51 = vpop.f32.mrf.mxu0 }
  0xdd   :  { %v165_v52 = vadd.f32 %v164_v51, %v96_v48  ;;  %v185_v55 = vmul.f32 0.1, %v173_v50  ;;  %vm181_vm2 = vcmp.gt.f32.partialorder %v173_v50, 0.0 }
  0xde   :  { %v1309_v54 = vpop.f32.mrf.mxu0 }
  0xdf   :  { %v176_v56 = vadd.f32 %v1309_v54, %v111_v53  ;;  %v183_v59 = vmul.f32 0.1, %v165_v52  ;;  %vm179_vm4 = vcmp.gt.f32.partialorder %v165_v52, 0.0  ;;  %v189_v63 = vsel %vm181_vm2, %v173_v50, %v185_v55  ;;  %v383_v54 = vpop.permute.xlu1 %382 }
  0xe0   :  { %v167_v58 = vpop.f32.mrf.mxu0 }
  0xe1   :  { %v186_v60 = vmul.f32 0.1, %v176_v56  ;;  %v168_v61 = vadd.f32 %v167_v58, %v101_v57  ;;  %vm182_vm3 = vcmp.gt.f32.partialorder %v176_v56, 0.0  ;;  %v187_v4 = vsel %vm179_vm4, %v165_v52, %v183_v59 }
  0xe3   :  { %vm180_vm5 = vcmp.gt.f32.partialorder %v168_v61, 0.0  ;;  %v184_v62 = vmul.f32 0.1, %v168_v61  ;;  %v190_v0 = vsel %vm182_vm3, %v176_v56, %v186_v60 }
  0xe4   :  { %v200_v3 = vpack.c.bf16 %v190_v0, %v189_v63 }
  0xe5   :  { %v188_v5 = vsel %vm180_vm5, %v168_v61, %v184_v62 }
  0xe6   :  { %1310 = vmatprep.subr.bf16.mxu1 %v200_v3  ;;  %v199_v6 = vpack.c.bf16 %v188_v5, %v187_v4  ;;  %v1408_v4 = vld [vmem:[%s1891_s9 + $0x8] sm:$0xff]  }
  0xe7   :  { %1311 = vmatpush3.bf16.msra.mxu1 %v200_v3 }
  0xe8   :  { %1312 = vmatprep.subr.bf16.mxu1 %v199_v6 }
  0xeb   :  { %1313 = vmatpush3.bf16.msra.mxu1 %v199_v6  ;;  %v500_v6 = vpop.permute.xlu1 %499 }
  0xee   :  { %1315 = vmatmul.mubr.msk.bf16.vlgmr.msra.gmra.mxu1 %vm231_vm1, %v1403_v7 }
  0xef   :  { %1328 = vmatprep.mubr.msk.bf16.mxu1 %vm123_vm0, %v1405_v32 }
 0x1ae   :  { %v1316_v11 = vpop.f32.mrf.mxu1 }
 0x1af   :  { %v281_v12 = vadd.f32 %v1316_v11, %v214_v9 }
 0x1b0   :  { %v272_v13 = vpop.f32.mrf.mxu1 }
 0x1b1   :  { %v293_v15 = vmul.f32 0.1, %v281_v12  ;;  %vm289_vm7 = vcmp.gt.f32.partialorder %v281_v12, 0.0  ;;  %v273_v17 = vadd.f32 %v272_v13, %v204_v14 }
 0x1b2   :  { %v1317_v16 = vpop.f32.mrf.mxu1 }
 0x1b3   :  { %v284_v18 = vadd.f32 %v1317_v16, %v219_v10  ;;  %v297_v23 = vsel %vm289_vm7, %v281_v12, %v293_v15  ;;  %v291_v24 = vmul.f32 0.1, %v273_v17  ;;  %vm287_vm10 = vcmp.gt.f32.partialorder %v273_v17, 0.0  ;;  %v490_v16 = vpop.permute.xlu1 %489 }
 0x1b4   :  { %v275_v20 = vpop.f32.mrf.mxu1 }
 0x1b5   :  { %vm290_vm8 = vcmp.gt.f32.partialorder %v284_v18, 0.0  ;;  %v294_v21 = vmul.f32 0.1, %v284_v18  ;;  %v276_v22 = vadd.f32 %v275_v20, %v209_v19  ;;  %v295_v29 = vsel %vm287_vm10, %v273_v17, %v291_v24 }
 0x1b7   :  { %v298_v25 = vsel %vm290_vm8, %v284_v18, %v294_v21  ;;  %vm288_vm9 = vcmp.gt.f32.partialorder %v276_v22, 0.0  ;;  %v292_v26 = vmul.f32 0.1, %v276_v22 }
 0x1b8   :  { %v304_v27 = vpack.c.bf16 %v298_v25, %v297_v23 }
 0x1b9   :  { %v296_v28 = vsel %vm288_vm9, %v276_v22, %v292_v26 }
 0x1ba   :  { %1319 = vmatpush3.bf16.msra.mxu0 %v304_v27  ;;  %v303_v30 = vpack.c.bf16 %v296_v28, %v295_v29  ;;  %v1409_v28 = vld [vmem:[%s1846_s11] sm:$0xff]  }
 0x1bb   :  { %1320 = vmatprep.subr.bf16.mxu0 %v1443_v8  ;;  %v1410_v29 = vld [vmem:[%s1848_s13] sm:$0xff]  }
 0x1be   :  { %1321 = vmatpush3.bf16.msra.mxu0 %v303_v30 }
 0x1c1   :  { %1323 = vmatmul.mubr.msk.bf16.vlgmr.msra.gmra.mxu0 %vm231_vm1, %v1404_v31 }
 0x281   :  { %v357_v33 = vpop.f32.mrf.mxu0 }
 0x282   :  { %v358_v36 = vadd.f32 %v357_v33, %v308_v34  ;;  %v593_v34 = vpop.permute.xlu1 %592 }
 0x283   :  { %v1324_v35 = vpop.f32.mrf.mxu0 }
 0x284   :  { %v1739_v41 = vadd.f32 %v358_v36, %v1584_v1  ;;  %v1407_v1 = vld [vmem:[%s1891_s9] sm:$0xff]  }
 0x285   :  { %v360_v38 = vpop.f32.mrf.mxu0  ;;  %1336 = vmatprep.mubr.msk.bf16.mxu0 %vm231_vm1, %v1407_v1 }
 0x286   :  { %v361_v39 = vadd.f32 %v360_v38, %v313_v37 }
 0x287   :  { %v1325_v40 = vpop.f32.mrf.mxu0 }
 0x288   :  { %v1742_v42 = vadd.f32 %v361_v39, %v1589_v2  ;;  %v388_v2 = vpop.permute.xlu0 %387 }
 0x28a   :  { %v374_v43 = vpack.c.bf16 %v1742_v42, %v1739_v41 }
 0x28c   :  { %1326 = vmatprep.subr.bf16.mxu1 %v374_v43  ;;  %v378_v48 = vpop.permute.xlu0 %377 }
 0x28d   :  { %1327 = vmatpush3.bf16.msra.mxu1 %v374_v43  ;;  %v1411_v43 = vld [vmem:[%s1848_s13 + $0x8] sm:$0xff]  }
 0x28e   :  { %1340 = vmatprep.subr.bf16.mxu1 %v1443_v8 }
 0x290   :  { %1329 = vmatmul.mubr.msk.bf16.vlgmr.msra.gmra.mxu1 %vm123_vm0, %v1406_v44  ;;  %v495_v5 = vpop.permute.xlu0 %494  ;;  %v673_v44 = vpop.permute.xlu1 %672 }
 0x291   :  { %1344 = vmatprep.mubr.msk.bf16.mxu1 %vm1444_vm6, %v1443_v8 }
 0x294   :  { %v485_v11 = vpop.permute.xlu0 %484 }
 0x298   :  { %v588_v31 = vpop.permute.xlu0 %587 }
 0x350   :  { %v1330_v46 = vpop.f32.mrf.mxu1 }
 0x351   :  { %v454_v47 = vadd.f32 %v1330_v46, %v388_v2 }
 0x352   :  { %v445_v49 = vpop.f32.mrf.mxu1 }
 0x353   :  { %v446_v50 = vadd.f32 %v445_v49, %v378_v48  ;;  %v466_v52 = vmul.f32 0.1, %v454_v47  ;;  %vm462_vm11 = vcmp.gt.f32.partialorder %v454_v47, 0.0 }
 0x354   :  { %v1331_v51 = vpop.f32.mrf.mxu1 }
 0x355   :  { %v457_v53 = vadd.f32 %v1331_v51, %v393_v45  ;;  %v464_v56 = vmul.f32 0.1, %v446_v50  ;;  %vm460_vm13 = vcmp.gt.f32.partialorder %v446_v50, 0.0  ;;  %v470_v60 = vsel %vm462_vm11, %v454_v47, %v466_v52  ;;  %v663_v51 = vpop.permute.xlu1 %662 }
 0x356   :  { %v448_v55 = vpop.f32.mrf.mxu1 }
 0x357   :  { %vm463_vm12 = vcmp.gt.f32.partialorder %v457_v53, 0.0  ;;  %v467_v57 = vmul.f32 0.1, %v457_v53  ;;  %v449_v58 = vadd.f32 %v448_v55, %v383_v54  ;;  %v468_v63 = vsel %vm460_vm13, %v446_v50, %v464_v56 }
 0x359   :  { %vm461_vm14 = vcmp.gt.f32.partialorder %v449_v58, 0.0  ;;  %v465_v59 = vmul.f32 0.1, %v449_v58  ;;  %v471_v61 = vsel %vm463_vm12, %v457_v53, %v467_v57 }
 0x35a   :  { %v481_v62 = vpack.c.bf16 %v471_v61, %v470_v60 }
 0x35b   :  { %v469_v0 = vsel %vm461_vm14, %v449_v58, %v465_v59 }
 0x35c   :  { %1332 = vmatprep.subr.bf16.mxu0 %v481_v62  ;;  %v480_v3 = vpack.c.bf16 %v469_v0, %v468_v63  ;;  %v1413_v63 = vld [vmem:[%s1850_s15 + $0x8] sm:$0xff]  }
 0x35d   :  { %1333 = vmatpush3.bf16.msra.mxu0 %v481_v62 }
 0x35e   :  { %1334 = vmatprep.subr.bf16.mxu0 %v480_v3 }
 0x361   :  { %1335 = vmatpush3.bf16.msra.mxu0 %v480_v3  ;;  %v780_v3 = vpop.permute.xlu1 %779 }
 0x364   :  { %1337 = vmatmul.mubr.msk.bf16.vlgmr.msra.gmra.mxu0 %vm231_vm1, %v1408_v4 }
 0x365   :  { %1350 = vmatprep.mubr.msk.bf16.mxu0 %vm123_vm0, %v1410_v29 }
 0x424   :  { %v1338_v7 = vpop.f32.mrf.mxu0 }
 0x425   :  { %v561_v9 = vadd.f32 %v1338_v7, %v495_v5 }
 0x426   :  { %v552_v10 = vpop.f32.mrf.mxu0 }
 0x427   :  { %v573_v12 = vmul.f32 0.1, %v561_v9  ;;  %vm569_vm15 = vcmp.gt.f32.partialorder %v561_v9, 0.0  ;;  %v553_v14 = vadd.f32 %v552_v10, %v485_v11 }
 0x428   :  { %v1339_v13 = vpop.f32.mrf.mxu0 }
 0x429   :  { %v564_v15 = vadd.f32 %v1339_v13, %v500_v6  ;;  %v577_v20 = vsel %vm569_vm15, %v561_v9, %v573_v12  ;;  %v571_v21 = vmul.f32 0.1, %v553_v14  ;;  %vm567_vm4 = vcmp.gt.f32.partialorder %v553_v14, 0.0  ;;  %v770_v13 = vpop.permute.xlu1 %769 }
 0x42a   :  { %v555_v17 = vpop.f32.mrf.mxu0 }
 0x42b   :  { %vm570_vm2 = vcmp.gt.f32.partialorder %v564_v15, 0.0  ;;  %v574_v18 = vmul.f32 0.1, %v564_v15  ;;  %v556_v19 = vadd.f32 %v555_v17, %v490_v16  ;;  %v575_v26 = vsel %vm567_vm4, %v553_v14, %v571_v21 }
 0x42d   :  { %v578_v22 = vsel %vm570_vm2, %v564_v15, %v574_v18  ;;  %vm568_vm3 = vcmp.gt.f32.partialorder %v556_v19, 0.0  ;;  %v572_v23 = vmul.f32 0.1, %v556_v19 }
 0x42e   :  { %v584_v24 = vpack.c.bf16 %v578_v22, %v577_v20 }
 0x42f   :  { %v576_v25 = vsel %vm568_vm3, %v556_v19, %v572_v23 }
 0x430   :  { %1341 = vmatpush3.bf16.msra.mxu1 %v584_v24  ;;  %v583_v27 = vpack.c.bf16 %v576_v25, %v575_v26  ;;  %v1414_v25 = vld [vmem:[%s1852_s17] sm:$0xff]  }
 0x431   :  { %1342 = vmatprep.subr.bf16.mxu1 %v1443_v8  ;;  %v1415_v26 = vld [vmem:[%s1892_s8] sm:$0xff]  }
 0x434   :  { %1343 = vmatpush3.bf16.msra.mxu1 %v583_v27 }
 0x437   :  { %1345 = vmatmul.mubr.msk.bf16.vlgmr.msra.gmra.mxu1 %vm231_vm1, %v1409_v28 }
 0x4f7   :  { %v637_v30 = vpop.f32.mrf.mxu1 }
 0x4f8   :  { %v638_v33 = vadd.f32 %v637_v30, %v588_v31  ;;  %v873_v31 = vpop.permute.xlu1 %872 }
 0x4f9   :  { %v1346_v32 = vpop.f32.mrf.mxu1 }
 0x4fa   :  { %v1771_v38 = vadd.f32 %v638_v33, %v1739_v41  ;;  %v1412_v41 = vld [vmem:[%s1850_s15] sm:$0xff]  }
 0x4fb   :  { %v640_v35 = vpop.f32.mrf.mxu1  ;;  %1358 = vmatprep.mubr.msk.bf16.mxu1 %vm231_vm1, %v1412_v41 }
 0x4fc   :  { %v641_v36 = vadd.f32 %v640_v35, %v593_v34 }
 0x4fd   :  { %v1347_v37 = vpop.f32.mrf.mxu1 }
 0x4fe   :  { %v1774_v39 = vadd.f32 %v641_v36, %v1742_v42  ;;  %v668_v42 = vpop.permute.xlu0 %667 }
 0x500   :  { %v654_v40 = vpack.c.bf16 %v1774_v39, %v1771_v38 }
 0x502   :  { %1348 = vmatprep.subr.bf16.mxu0 %v654_v40  ;;  %v658_v45 = vpop.permute.xlu0 %657 }
 0x503   :  { %1349 = vmatpush3.bf16.msra.mxu0 %v654_v40  ;;  %v1416_v40 = vld [vmem:[%s1892_s8 + $0x8] sm:$0xff]  }
 0x504   :  { %1362 = vmatprep.subr.bf16.mxu0 %v1443_v8 }
 0x506   :  { %1351 = vmatmul.mubr.msk.bf16.vlgmr.msra.gmra.mxu0 %vm123_vm0, %v1411_v43  ;;  %v775_v0 = vpop.permute.xlu0 %774  ;;  %v953_v43 = vpop.permute.xlu1 %952 }
 0x507   :  { %1366 = vmatprep.mubr.msk.bf16.mxu0 %vm1444_vm6, %v1443_v8 }
 0x50a   :  { %v765_v7 = vpop.permute.xlu0 %764 }
 0x50e   :  { %v868_v28 = vpop.permute.xlu0 %867 }
 0x5c6   :  { %v1352_v1 = vpop.f32.mrf.mxu0 }
 0x5c7   :  { %v734_v2 = vadd.f32 %v1352_v1, %v668_v42 }
 0x5c8   :  { %v725_v46 = vpop.f32.mrf.mxu0 }
 0x5c9   :  { %v726_v47 = vadd.f32 %v725_v46, %v658_v45  ;;  %v746_v49 = vmul.f32 0.1, %v734_v2  ;;  %vm742_vm5 = vcmp.gt.f32.partialorder %v734_v2, 0.0 }
 0x5ca   :  { %v1353_v48 = vpop.f32.mrf.mxu0 }
 0x5cb   :  { %v737_v50 = vadd.f32 %v1353_v48, %v673_v44  ;;  %v744_v53 = vmul.f32 0.1, %v726_v47  ;;  %vm740_vm8 = vcmp.gt.f32.partialorder %v726_v47, 0.0  ;;  %v750_v57 = vsel %vm742_vm5, %v734_v2, %v746_v49  ;;  %v943_v48 = vpop.permute.xlu1 %942 }
 0x5cc   :  { %v728_v52 = vpop.f32.mrf.mxu0 }
 0x5cd   :  { %vm743_vm7 = vcmp.gt.f32.partialorder %v737_v50, 0.0  ;;  %v747_v54 = vmul.f32 0.1, %v737_v50  ;;  %v729_v55 = vadd.f32 %v728_v52, %v663_v51  ;;  %v748_v60 = vsel %vm740_vm8, %v726_v47, %v744_v53 }
 0x5cf   :  { %vm741_vm9 = vcmp.gt.f32.partialorder %v729_v55, 0.0  ;;  %v745_v56 = vmul.f32 0.1, %v729_v55  ;;  %v751_v58 = vsel %vm743_vm7, %v737_v50, %v747_v54 }
 0x5d0   :  { %v761_v59 = vpack.c.bf16 %v751_v58, %v750_v57 }
 0x5d1   :  { %v749_v61 = vsel %vm741_vm9, %v729_v55, %v745_v56 }
 0x5d2   :  { %1354 = vmatprep.subr.bf16.mxu1 %v761_v59  ;;  %v760_v62 = vpack.c.bf16 %v749_v61, %v748_v60  ;;  %v1418_v60 = vld [vmem:[%s1856_s21 + $0x8] sm:$0xff]  }
 0x5d3   :  { %1355 = vmatpush3.bf16.msra.mxu1 %v761_v59 }
 0x5d4   :  { %1356 = vmatprep.subr.bf16.mxu1 %v760_v62 }
 0x5d7   :  { %1357 = vmatpush3.bf16.msra.mxu1 %v760_v62  ;;  %v1060_v62 = vpop.permute.xlu1 %1059 }
 0x5da   :  { %1359 = vmatmul.mubr.msk.bf16.vlgmr.msra.gmra.mxu1 %vm231_vm1, %v1413_v63 }
 0x5db   :  { %1372 = vmatprep.mubr.msk.bf16.mxu1 %vm123_vm0, %v1415_v26 }
 0x69a   :  { %v1360_v4 = vpop.f32.mrf.mxu1 }
 0x69b   :  { %v841_v5 = vadd.f32 %v1360_v4, %v775_v0 }
 0x69c   :  { %v832_v6 = vpop.f32.mrf.mxu1 }
 0x69d   :  { %v853_v9 = vmul.f32 0.1, %v841_v5  ;;  %vm849_vm10 = vcmp.gt.f32.partialorder %v841_v5, 0.0  ;;  %v833_v11 = vadd.f32 %v832_v6, %v765_v7 }
 0x69e   :  { %v1361_v10 = vpop.f32.mrf.mxu1 }
 0x69f   :  { %v844_v12 = vadd.f32 %v1361_v10, %v780_v3  ;;  %v857_v17 = vsel %vm849_vm10, %v841_v5, %v853_v9  ;;  %v851_v18 = vmul.f32 0.1, %v833_v11  ;;  %vm847_vm13 = vcmp.gt.f32.partialorder %v833_v11, 0.0  ;;  %v1050_v10 = vpop.permute.xlu1 %1049 }
 0x6a0   :  { %v835_v14 = vpop.f32.mrf.mxu1 }
 0x6a1   :  { %vm850_vm11 = vcmp.gt.f32.partialorder %v844_v12, 0.0  ;;  %v854_v15 = vmul.f32 0.1, %v844_v12  ;;  %v836_v16 = vadd.f32 %v835_v14, %v770_v13  ;;  %v855_v23 = vsel %vm847_vm13, %v833_v11, %v851_v18 }
 0x6a3   :  { %v858_v19 = vsel %vm850_vm11, %v844_v12, %v854_v15  ;;  %vm848_vm12 = vcmp.gt.f32.partialorder %v836_v16, 0.0  ;;  %v852_v20 = vmul.f32 0.1, %v836_v16 }
 0x6a4   :  { %v864_v21 = vpack.c.bf16 %v858_v19, %v857_v17 }
 0x6a5   :  { %v856_v22 = vsel %vm848_vm12, %v836_v16, %v852_v20 }
 0x6a6   :  { %1363 = vmatpush3.bf16.msra.mxu0 %v864_v21  ;;  %v863_v24 = vpack.c.bf16 %v856_v22, %v855_v23  ;;  %v1419_v22 = vld [vmem:[%s1858_s23] sm:$0xff]   ;;  %s1420_s23 = scalar_lea.vmem %s1214_s12, 256 }
 0x6a7   :  { %1364 = vmatprep.subr.bf16.mxu0 %v1443_v8  ;;  %p1421_p0 = scmp.ne.s32.totalorder %s1214_s12, %s1420_s23  ;;  %p1426_p2 = scmp.lt.s32.totalorder %s1420_s23, %s1420_s23 }
 0x6a9   :  { %p1427_p3 = por %p1426_p2, %p1425_p1 }
 0x6aa   :  { %1365 = vmatpush3.bf16.msra.mxu0 %v863_v24 }
 0x6ab   :  { %p1428_p4 = pnand %p1427_p3, %p1421_p0 }
 0x6ad   :  { %1367 = vmatmul.mubr.msk.bf16.vlgmr.msra.gmra.mxu0 %vm231_vm1, %v1414_v25 }
 0x76d   :  { %v917_v27 = vpop.f32.mrf.mxu0 }
 0x76e   :  { %v918_v30 = vadd.f32 %v917_v27, %v868_v28  ;;  %v1153_v28 = vpop.permute.xlu1 %1152 }
 0x76f   :  { %v1368_v29 = vpop.f32.mrf.mxu0 }
 0x770   :  { %v1803_v35 = vadd.f32 %v918_v30, %v1771_v38  ;;  %v1417_v38 = vld [vmem:[%s1856_s21] sm:$0xff]  }
 0x771   :  { %v920_v32 = vpop.f32.mrf.mxu0  ;;  %1380 = vmatprep.mubr.msk.bf16.mxu0 %vm231_vm1, %v1417_v38 }
 0x772   :  { %v921_v33 = vadd.f32 %v920_v32, %v873_v31 }
 0x773   :  { %v1369_v34 = vpop.f32.mrf.mxu0 }
 0x774   :  { %v1806_v36 = vadd.f32 %v921_v33, %v1774_v39  ;;  %v948_v39 = vpop.permute.xlu0 %947 }
 0x776   :  { %v934_v37 = vpack.c.bf16 %v1806_v36, %v1803_v35 }
 0x778   :  { %1370 = vmatprep.subr.bf16.mxu1 %v934_v37  ;;  %v938_v44 = vpop.permute.xlu0 %937 }
 0x779   :  { %1371 = vmatpush3.bf16.msra.mxu1 %v934_v37 }
 0x77a   :  { %1384 = vmatprep.subr.bf16.mxu1 %v1443_v8 }
 0x77c   :  { %1373 = vmatmul.mubr.msk.bf16.vlgmr.msra.gmra.mxu1 %vm123_vm0, %v1416_v40  ;;  %v1055_v61 = vpop.permute.xlu0 %1054 }
 0x77d   :  { %1388 = vmatprep.mubr.msk.bf16.mxu1 %vm1444_vm6, %v1443_v8 }
 0x780   :  { %v1045_v4 = vpop.permute.xlu0 %1044 }
 0x784   :  { %v1148_v23 = vpop.permute.xlu0 %1147 }
 0x83c   :  { %v1374_v41 = vpop.f32.mrf.mxu1 }
 0x83d   :  { %v1014_v42 = vadd.f32 %v1374_v41, %v948_v39 }
 0x83e   :  { %v1005_v1 = vpop.f32.mrf.mxu1 }
 0x83f   :  { %v1006_v2 = vadd.f32 %v1005_v1, %v938_v44  ;;  %v1026_v46 = vmul.f32 0.1, %v1014_v42  ;;  %vm1022_vm0 = vcmp.gt.f32.partialorder %v1014_v42, 0.0 }
 0x840   :  { %v1375_v45 = vpop.f32.mrf.mxu1 }
 0x841   :  { %v1017_v47 = vadd.f32 %v1375_v45, %v953_v43  ;;  %v1024_v50 = vmul.f32 0.1, %v1006_v2  ;;  %vm1020_vm14 = vcmp.gt.f32.partialorder %v1006_v2, 0.0  ;;  %v1030_v54 = vsel %vm1022_vm0, %v1014_v42, %v1026_v46 }
 0x842   :  { %v1008_v49 = vpop.f32.mrf.mxu1 }
 0x843   :  { %vm1023_vm6 = vcmp.gt.f32.partialorder %v1017_v47, 0.0  ;;  %v1027_v51 = vmul.f32 0.1, %v1017_v47  ;;  %v1009_v52 = vadd.f32 %v1008_v49, %v943_v48  ;;  %v1028_v57 = vsel %vm1020_vm14, %v1006_v2, %v1024_v50 }
 0x845   :  { %vm1021_vm15 = vcmp.gt.f32.partialorder %v1009_v52, 0.0  ;;  %v1025_v53 = vmul.f32 0.1, %v1009_v52  ;;  %v1031_v55 = vsel %vm1023_vm6, %v1017_v47, %v1027_v51 }
 0x846   :  { %v1041_v56 = vpack.c.bf16 %v1031_v55, %v1030_v54 }
 0x847   :  { %v1029_v58 = vsel %vm1021_vm15, %v1009_v52, %v1025_v53 }
 0x848   :  { %1376 = vmatprep.subr.bf16.mxu0 %v1041_v56  ;;  %v1040_v59 = vpack.c.bf16 %v1029_v58, %v1028_v57 }
 0x849   :  { %1377 = vmatpush3.bf16.msra.mxu0 %v1041_v56 }
 0x84a   :  { %1378 = vmatprep.subr.bf16.mxu0 %v1040_v59 }
 0x84d   :  { %1379 = vmatpush3.bf16.msra.mxu0 %v1040_v59 }
 0x850   :  { %1381 = vmatmul.mubr.msk.bf16.vlgmr.msra.gmra.mxu0 %vm231_vm1, %v1418_v60 }
 0x910   :  { %v1382_v63 = vpop.f32.mrf.mxu0 }
 0x911   :  { %v1121_v0 = vadd.f32 %v1382_v63, %v1055_v61 }
 0x912   :  { %v1112_v3 = vpop.f32.mrf.mxu0 }
 0x913   :  { %v1133_v5 = vmul.f32 0.1, %v1121_v0  ;;  %vm1129_vm2 = vcmp.gt.f32.partialorder %v1121_v0, 0.0  ;;  %v1113_v7 = vadd.f32 %v1112_v3, %v1045_v4 }
 0x914   :  { %v1383_v6 = vpop.f32.mrf.mxu0 }
 0x915   :  { %v1124_v9 = vadd.f32 %v1383_v6, %v1060_v62  ;;  %v1137_v14 = vsel %vm1129_vm2, %v1121_v0, %v1133_v5  ;;  %v1131_v15 = vmul.f32 0.1, %v1113_v7  ;;  %vm1127_vm5 = vcmp.gt.f32.partialorder %v1113_v7, 0.0 }
 0x916   :  { %v1115_v11 = vpop.f32.mrf.mxu0 }
 0x917   :  { %vm1130_vm3 = vcmp.gt.f32.partialorder %v1124_v9, 0.0  ;;  %v1134_v12 = vmul.f32 0.1, %v1124_v9  ;;  %v1116_v13 = vadd.f32 %v1115_v11, %v1050_v10  ;;  %v1135_v20 = vsel %vm1127_vm5, %v1113_v7, %v1131_v15 }
 0x919   :  { %v1138_v16 = vsel %vm1130_vm3, %v1124_v9, %v1134_v12  ;;  %vm1128_vm4 = vcmp.gt.f32.partialorder %v1116_v13, 0.0  ;;  %v1132_v17 = vmul.f32 0.1, %v1116_v13 }
 0x91a   :  { %v1144_v18 = vpack.c.bf16 %v1138_v16, %v1137_v14 }
 0x91b   :  { %v1136_v19 = vsel %vm1128_vm4, %v1116_v13, %v1132_v17 }
 0x91c   :  { %1385 = vmatpush3.bf16.msra.mxu1 %v1144_v18  ;;  %v1143_v21 = vpack.c.bf16 %v1136_v19, %v1135_v20 }
 0x91d   :  { %1386 = vmatprep.subr.bf16.mxu1 %v1443_v8 }
 0x920   :  { %1387 = vmatpush3.bf16.msra.mxu1 %v1143_v21 }
 0x923   :  { %1389 = vmatmul.mubr.msk.bf16.vlgmr.msra.gmra.mxu1 %vm231_vm1, %v1419_v22 }
 0x9e3   :  { %v1197_v24 = vpop.f32.mrf.mxu1 }
 0x9e4   :  { %v1198_v25 = vadd.f32 %v1197_v24, %v1148_v23 }
 0x9e5   :  { %v1390_v26 = vpop.f32.mrf.mxu1 }
 0x9e6   :  { %v1204_v27 = vadd.f32 %v1198_v25, %v1803_v35 }
 0x9e7   :  { %v1200_v29 = vpop.f32.mrf.mxu1 }
 0x9e8   :  { %1206 = vst [vmem:[#allocation2] sm:$0xff] %v1204_v27  ;;  %v1201_v8 = vadd.f32 %v1200_v29, %v1153_v28 }
 0x9e9   :  { %v1391_v30 = vpop.f32.mrf.mxu1 }
 0x9ea   :  { %v1205_v31 = vadd.f32 %v1201_v8, %v1806_v36 }
 0x9ec   :  { %1207 = vst [vmem:[#allocation2 + $0x8] sm:$0xff] %v1205_v31 }
 0x9ed   :  { %1431 = shalt.err (!%p1428_p4)
}
 0x9ee   :  { %s1446_s19 = smov 128   ;;  %s1447_s9 = smov 8  }
 0x9ef   :  { %1219 = dma.vmem_to_hbm [thread:$0]  %s1214_s12, 256, %s1860_s25, [#allocation3], %s1446_s19, %s1446_s19, %s1447_s9  }
 0x9f0   :  { %1440 = dma.done.wait [#allocation3], 256  }
 0x9f1   :  { %1441 = vsyncadd [#allocation3], 4294967040 }
 0x9f2   :  { %1223 = vsyncpa [#allocation3], 1 }

</bundles_post_ra>
